<compile_context>
chip_gen: v6e
topology: v6e:2x2x1
jax: 0.10.0
libtpu: 0.0.40
codegen_flags: <defaults>
</compile_context>

<pallas_src>
import functools

import jax
import jax.numpy as jnp
from jax import lax
from jax.experimental import pallas as pl
from jax.experimental.pallas import tpu as pltpu

EPS = 1e-5


def _silu(x):
    return x * jax.nn.sigmoid(x)


def _pack_stats(z):
    """One-pass per-channel sum / sum-of-squares, padded to 8 sublanes."""
    s = jnp.sum(z, axis=0, keepdims=True)          # (1, C)
    ss = jnp.sum(z * z, axis=0, keepdims=True)     # (1, C)
    pad = jnp.zeros((6, z.shape[-1]), jnp.float32)
    return jnp.concatenate([s, ss, pad], axis=0)[None]   # (1, 8, C)


# --------------------------------------------------------------------------
# Kernel 1: cv1 = 1x1 conv (channel matmul) + partial BN1 statistics.
# --------------------------------------------------------------------------
def _cv1_kernel(x_ref, w1_ref, b1_ref, z1_ref, stats_ref):
    x = x_ref[...].astype(w1_ref.dtype)            # cast for MXU (bf16 or f32)
    z = jnp.dot(x, w1_ref[...], preferred_element_type=jnp.float32) + b1_ref[...]
    z1_ref[...] = z
    stats_ref[...] = _pack_stats(z)


# --------------------------------------------------------------------------
# Kernel 2: BN1 + SiLU, then 3x3 conv (stride 1, pad 1) as nine shifted
#           channel matmuls accumulated into a VMEM scratch accumulator,
#           plus partial BN2 statistics.  One image per grid step.
# --------------------------------------------------------------------------
def _cv2_kernel(z1_ref, scale1_ref, shift1_ref, w2_ref, b2_ref,
                z2_ref, stats_ref, acc_ref):
    _, H, W, Cp = z1_ref.shape
    z1 = z1_ref[0]                                           # (H, W, Cp) f32
    h1 = _silu(z1 * scale1_ref[...] + shift1_ref[...])       # BN1 + SiLU (f32)
    h1m = h1.astype(w2_ref.dtype)                            # MXU dtype

    # zero-padded halo for the 3x3 conv (single padded copy, MXU dtype)
    padded = jnp.zeros((H + 2, W + 2, Cp), h1m.dtype)
    padded = lax.dynamic_update_slice(padded, h1m, (1, 1, 0))

    acc_ref[...] = jnp.zeros_like(acc_ref)                   # f32 scratch acc
    for ky in range(3):
        for kx in range(3):
            tap = padded[ky:ky + H, kx:kx + W, :].reshape(H * W, Cp)
            acc_ref[...] += jnp.dot(tap, w2_ref[ky, kx],
                                    preferred_element_type=jnp.float32)

    z2 = acc_ref[...] + b2_ref[...]                          # (H*W, Cp) f32
    z2_ref[...] = z2.reshape(1, H, W, Cp)
    stats_ref[...] = _pack_stats(z2)


# --------------------------------------------------------------------------
# Kernel 3: BN2 + SiLU + residual add, per row-tile.
# --------------------------------------------------------------------------
def _bn_silu_residual_kernel(x_ref, z2_ref, scale_ref, shift_ref, o_ref, *, add):
    h2 = _silu(z2_ref[...] * scale_ref[...] + shift_ref[...])
    o_ref[...] = (x_ref[...] + h2) if add else h2


# --------------------------------------------------------------------------
# Host-side helpers
# --------------------------------------------------------------------------
def _pick_row_tile(rows):
    """Largest 8-aligned row tile that divides `rows` and gives >= 2 grid steps."""
    for t in (1024, 512, 256, 128, 64, 32, 16, 8):
        if rows % t == 0 and rows // t >= 2:
            return t
    return rows


def _finalize_bn(partial_stats, count, gamma, beta):
    """Reduce per-tile sum/sumsq to folded BN scale/shift (f32, (1, Cp))."""
    sums = jnp.sum(partial_stats, axis=0)                    # (8, Cp)
    mu = sums[0] / count                                     # (Cp,)
    var = jnp.maximum(sums[1] / count - mu * mu, 0.0)
    scale = gamma * lax.rsqrt(var + EPS)                     # (1, Cp)
    shift = beta - mu * scale                                # (1, Cp)
    return scale, shift


def bottleneck_pallas(x, params, shortcut=True, mxu_dtype=jnp.bfloat16):
    """x: (N, H, W, C) float32, NHWC layout."""
    w1, b1, g1, be1, w2, b2, g2, be2 = params
    N, H, W, C = x.shape
    if shortcut:
        assert w2.shape[-1] == C, "residual add requires ch_in == ch_out"

    Cp = max(128, ((C + 127) // 128) * 128)
    pad_c = Cp - C
    rows = N * H * W
    TR = _pick_row_tile(rows)
    n_tiles = rows // TR

    # --- channel padding (padded channels stay exactly zero end-to-end) ---
    xp = jnp.pad(x, ((0, 0), (0, 0), (0, 0), (0, pad_c)))              # f32
    w1p = jnp.pad(w1, ((0, pad_c), (0, pad_c))).astype(mxu_dtype)
    w2p = jnp.pad(w2, ((0, 0), (0, 0), (0, pad_c), (0, pad_c))).astype(mxu_dtype)

    def padv(v):
        return jnp.pad(v.reshape(1, C), ((0, 0), (0, pad_c)))

    b1p, g1p, be1p = padv(b1), padv(g1), padv(be1)
    b2p, g2p, be2p = padv(b2), padv(g2), padv(be2)

    xm = xp.reshape(rows, Cp)

    # ---------------- Stage 1: 1x1 conv + partial BN1 stats ----------------
    z1, stats1 = pl.pallas_call(
        _cv1_kernel,
        out_shape=(jax.ShapeDtypeStruct((rows, Cp), jnp.float32),
                   jax.ShapeDtypeStruct((n_tiles, 8, Cp), jnp.float32)),
        grid_spec=pltpu.PrefetchScalarGridSpec(
            num_scalar_prefetch=0,
            grid=(n_tiles,),
            in_specs=[pl.BlockSpec((TR, Cp), lambda i: (i, 0)),
                      pl.BlockSpec((Cp, Cp), lambda i: (0, 0)),
                      pl.BlockSpec((1, Cp), lambda i: (0, 0))],
            out_specs=(pl.BlockSpec((TR, Cp), lambda i: (i, 0)),
                       pl.BlockSpec((1, 8, Cp), lambda i: (i, 0, 0)))),
        compiler_params=pltpu.CompilerParams(
            dimension_semantics=("parallel",)),
    )(xm, w1p, b1p)

    scale1, shift1 = _finalize_bn(stats1, rows, g1p, be1p)

    # ---------------- Stage 2: BN1+SiLU, 3x3 conv, partial BN2 stats -------
    z1_img = z1.reshape(N, H, W, Cp)
    z2, stats2 = pl.pallas_call(
        _cv2_kernel,
        out_shape=(jax.ShapeDtypeStruct((N, H, W, Cp), jnp.float32),
                   jax.ShapeDtypeStruct((N, 8, Cp), jnp.float32)),
        grid_spec=pltpu.PrefetchScalarGridSpec(
            num_scalar_prefetch=0,
            grid=(N,),
            in_specs=[pl.BlockSpec((1, H, W, Cp), lambda n: (n, 0, 0, 0)),
                      pl.BlockSpec((1, Cp), lambda n: (0, 0)),
                      pl.BlockSpec((1, Cp), lambda n: (0, 0)),
                      pl.BlockSpec((3, 3, Cp, Cp), lambda n: (0, 0, 0, 0)),
                      pl.BlockSpec((1, Cp), lambda n: (0, 0))],
            out_specs=(pl.BlockSpec((1, H, W, Cp), lambda n: (n, 0, 0, 0)),
                       pl.BlockSpec((1, 8, Cp), lambda n: (n, 0, 0))),
            scratch_shapes=[pltpu.VMEM((H * W, Cp), jnp.float32)]),
        compiler_params=pltpu.CompilerParams(
            dimension_semantics=("parallel",)),
    )(z1_img, scale1, shift1, w2p, b2p)

    scale2, shift2 = _finalize_bn(stats2, rows, g2p, be2p)

    # ---------------- Stage 3: BN2 + SiLU + residual ------------------------
    z2m = z2.reshape(rows, Cp)
    out = pl.pallas_call(
        functools.partial(_bn_silu_residual_kernel, add=shortcut),
        out_shape=jax.ShapeDtypeStruct((rows, Cp), jnp.float32),
        grid_spec=pltpu.PrefetchScalarGridSpec(
            num_scalar_prefetch=0,
            grid=(n_tiles,),
            in_specs=[pl.BlockSpec((TR, Cp), lambda i: (i, 0)),
                      pl.BlockSpec((TR, Cp), lambda i: (i, 0)),
                      pl.BlockSpec((1, Cp), lambda i: (0, 0)),
                      pl.BlockSpec((1, Cp), lambda i: (0, 0))],
            out_specs=pl.BlockSpec((TR, Cp), lambda i: (i, 0))),
        compiler_params=pltpu.CompilerParams(
            dimension_semantics=("parallel",)),
    )(xm, z2m, scale2, shift2)

    return out.reshape(N, H, W, Cp)[..., :C]


# --------------------------------------------------------------------------
# Pure-JAX reference (NHWC) and parameter construction
# --------------------------------------------------------------------------
def bottleneck_ref(x, params, shortcut=True):
    w1, b1, g1, be1, w2, b2, g2, be2 = params

    def conv_bn_silu(h, w_hwio, b, g, be, pad):
        z = lax.conv_general_dilated(
            h, w_hwio, window_strides=(1, 1), padding=pad,
            dimension_numbers=('NHWC', 'HWIO', 'NHWC')) + b.reshape(-1)
        mu = jnp.mean(z, axis=(0, 1, 2), keepdims=True)
        var = jnp.mean(jnp.square(z - mu), axis=(0, 1, 2), keepdims=True)
        zn = g.reshape(-1) * (z - mu) * lax.rsqrt(var + EPS) + be.reshape(-1)
        return zn * jax.nn.sigmoid(zn)

    C = x.shape[-1]
    h1 = conv_bn_silu(x, w1.reshape(1, 1, C, C), b1, g1, be1,
                      [(0, 0), (0, 0)])
    h2 = conv_bn_silu(h1, w2, b2, g2, be2, [(1, 1), (1, 1)])
    return x + h2 if shortcut else h2


def make_params(key, ch):
    ks = jax.random.split(key, 8)
    scale1 = 1.0 / jnp.sqrt(ch * 1 * 1)
    scale2 = 1.0 / jnp.sqrt(ch * 3 * 3)
    w1 = jax.random.uniform(ks[0], (ch, ch), jnp.float32, -scale1, scale1)
    b1 = jax.random.uniform(ks[1], (1, ch), jnp.float32, -scale1, scale1)
    g1 = 1.0 + 0.1 * jax.random.normal(ks[2], (1, ch), jnp.float32)
    be1 = 0.1 * jax.random.normal(ks[3], (1, ch), jnp.float32)
    w2 = jax.random.uniform(ks[4], (3, 3, ch, ch), jnp.float32, -scale2, scale2)
    b2 = jax.random.uniform(ks[5], (1, ch), jnp.float32, -scale2, scale2)
    g2 = 1.0 + 0.1 * jax.random.normal(ks[6], (1, ch), jnp.float32)
    be2 = 0.1 * jax.random.normal(ks[7], (1, ch), jnp.float32)
    return (w1, b1, g1, be1, w2, b2, g2, be2)


if __name__ == "__main__":
    key = jax.random.PRNGKey(0)
    k_x, k_p = jax.random.split(key)

    N, C, H, W = 2, 4, 16, 16                      # PyTorch sees NCHW (2,4,16,16)
    x_nchw = jax.random.normal(k_x, (N, C, H, W), jnp.float32)
    x = jnp.transpose(x_nchw, (0, 2, 3, 1))        # -> NHWC for the kernels
    params = make_params(k_p, C)

    ref = bottleneck_ref(x, params, shortcut=True)

    # f32 MXU path (tight check; the v5e-safe configuration).
    out_f32 = jax.block_until_ready(
        bottleneck_pallas(x, params, shortcut=True, mxu_dtype=jnp.float32))
    assert out_f32.shape == (N, H, W, C)
    assert jnp.allclose(out_f32, ref, atol=1e-4, rtol=1e-4), \
        float(jnp.max(jnp.abs(out_f32 - ref)))

    # bf16 MXU path (fast path on v6e/v7x); looser tolerance vs the f32 reference.
    out_bf16 = jax.block_until_ready(
        bottleneck_pallas(x, params, shortcut=True, mxu_dtype=jnp.bfloat16))
    assert out_bf16.shape == (N, H, W, C)
    assert jnp.allclose(out_bf16, ref, atol=5e-2, rtol=5e-2), \
        float(jnp.max(jnp.abs(out_bf16 - ref)))

    print("KERNEL_OK")
</pallas_src>

<mosaic_0001>
module attributes {stable_mosaic.version = 11 : i64} {
  func.func @_cv1_kernel(%arg0: i32, %arg1: memref<256x128xf32, #tpu.memory_space<vmem>>, %arg2: memref<128x128xf32, #tpu.memory_space<vmem>>, %arg3: memref<1x128xf32, #tpu.memory_space<vmem>>, %arg4: memref<256x128xf32, #tpu.memory_space<vmem>>, %arg5: memref<1x8x128xf32, #tpu.memory_space<vmem>>) attributes {dimension_semantics = [#tpu.dimension_semantics<parallel>], iteration_bounds = array<i64: 2>, scalar_prefetch = 0 : i64, scratch_operands = 0 : i64, tpu.core_type = #tpu.core_type<tc>, window_params = [{transform_indices = @transform_0, window_bounds = array<i64: 256, 128>}, {pipeline_mode = #tpu.pipeline_mode<synchronous>, transform_indices = @transform_1, window_bounds = array<i64: 128, 128>}, {pipeline_mode = #tpu.pipeline_mode<synchronous>, transform_indices = @transform_2, window_bounds = array<i64: 1, 128>}, {transform_indices = @transform_3, window_bounds = array<i64: 256, 128>}, {transform_indices = @transform_4, window_bounds = array<i64: 1, 8, 128>}]} {
    %c0 = arith.constant 0 : index
    %c0_0 = arith.constant 0 : index
    %0 = vector.load %arg1[%c0, %c0_0] : memref<256x128xf32, #tpu.memory_space<vmem>>, vector<256x128xf32>
    %c0_1 = arith.constant 0 : index
    %c0_2 = arith.constant 0 : index
    %1 = vector.load %arg2[%c0_1, %c0_2] : memref<128x128xf32, #tpu.memory_space<vmem>>, vector<128x128xf32>
    %cst = arith.constant dense<0.000000e+00> : vector<256x128xf32>
    %2 = tpu.matmul %0, %1, %cst {dimension_numbers = #tpu.dot_dimension_numbers<[1], [0], [0], [1], [0, 0, 1, 1], [], []>} : vector<256x128xf32>, vector<128x128xf32>, vector<256x128xf32> -> vector<256x128xf32>
    %c0_3 = arith.constant 0 : index
    %c0_4 = arith.constant 0 : index
    %3 = vector.load %arg3[%c0_3, %c0_4] : memref<1x128xf32, #tpu.memory_space<vmem>>, vector<1x128xf32>
    %4 = vector.broadcast %3 : vector<1x128xf32> to vector<256x128xf32>
    %5 = arith.addf %2, %4 : vector<256x128xf32>
    %c0_5 = arith.constant 0 : index
    %c0_6 = arith.constant 0 : index
    %6 = vector.load %arg4[%c0_5, %c0_6] : memref<256x128xf32, #tpu.memory_space<vmem>>, vector<256x128xf32>
    tpu.vector_store %arg4[%c0_5, %c0_6], %5 {strides = array<i32>} : memref<256x128xf32, #tpu.memory_space<vmem>>, vector<256x128xf32>,
    %cst_7 = arith.constant dense<0.000000e+00> : vector<128xf32>
    %7 = vector.multi_reduction <add>, %5, %cst_7 [0] : vector<256x128xf32> to vector<128xf32>
    %8 = vector.shape_cast %7 : vector<128xf32> to vector<1x128xf32>
    %9 = arith.mulf %5, %5 : vector<256x128xf32>
    %cst_8 = arith.constant dense<0.000000e+00> : vector<128xf32>
    %10 = vector.multi_reduction <add>, %9, %cst_8 [0] : vector<256x128xf32> to vector<128xf32>
    %11 = vector.shape_cast %10 : vector<128xf32> to vector<1x128xf32>
    %cst_9 = arith.constant 0.000000e+00 : f32
    %12 = vector.broadcast %cst_9 : f32 to vector<6x128xf32>
    %13 = tpu.concatenate %8, %11, %12 in 0 : vector<1x128xf32>, vector<1x128xf32>, vector<6x128xf32> -> vector<8x128xf32>
    %14 = vector.shape_cast %13 : vector<8x128xf32> to vector<1x8x128xf32>
    %c0_10 = arith.constant 0 : index
    %c0_11 = arith.constant 0 : index
    %c0_12 = arith.constant 0 : index
    %15 = vector.load %arg5[%c0_10, %c0_11, %c0_12] : memref<1x8x128xf32, #tpu.memory_space<vmem>>, vector<1x8x128xf32>
    tpu.vector_store %arg5[%c0_10, %c0_11, %c0_12], %14 {strides = array<i32>} : memref<1x8x128xf32, #tpu.memory_space<vmem>>, vector<1x8x128xf32>,
    return
  }
  func.func @transform_0(%arg0: i32) -> (i32, i32) {
    %c0_i32 = arith.constant 0 : i32
    %c0_i32_0 = arith.constant 0 : i32
    return %arg0, %c0_i32 : i32, i32
  }
  func.func @transform_1(%arg0: i32) -> (i32, i32) {
    %c0_i32 = arith.constant 0 : i32
    %c0_i32_0 = arith.constant 0 : i32
    %c0_i32_1 = arith.constant 0 : i32
    return %c0_i32, %c0_i32_0 : i32, i32
  }
  func.func @transform_2(%arg0: i32) -> (i32, i32) {
    %c0_i32 = arith.constant 0 : i32
    %c0_i32_0 = arith.constant 0 : i32
    %c0_i32_1 = arith.constant 0 : i32
    return %c0_i32, %c0_i32_0 : i32, i32
  }
  func.func @transform_3(%arg0: i32) -> (i32, i32) {
    %c0_i32 = arith.constant 0 : i32
    %c0_i32_0 = arith.constant 0 : i32
    return %arg0, %c0_i32 : i32, i32
  }
  func.func @transform_4(%arg0: i32) -> (i32, i32, i32) {
    %c0_i32 = arith.constant 0 : i32
    %c0_i32_0 = arith.constant 0 : i32
    %c0_i32_1 = arith.constant 0 : i32
    return %arg0, %c0_i32, %c0_i32_0 : i32, i32, i32
  }
}

</mosaic_0001>

<bundles_post_ra>
// kernel: tpu_custom_call.1
= control target key start
LH: loop header
LB: loop body
LE: loop exit
PB: predicated region body
PF: predicated region fallthrough
CT: control target
= control target key end

     0   :  { %10 = vsyncpa [#allocation3], 0  ;;  %s1662_s0 = inlined_call_operand.hbm [shape: f32[512,128], index: 0, kind: input, shape index: {}]   ;;  %s1663_s1 = inlined_call_operand.hbm [shape: f32[128,128], index: 1, kind: input, shape index: {}]   ;;  %s1664_s2 = inlined_call_operand.vmem [shape: f32[1,128], index: 2, kind: input, shape index: {}]   ;;  %s1665_s3 = inlined_call_operand.hbm [shape: f32[512,128], index: 3, kind: output, shape index: {0}]   ;;  %s1666_s4 = inlined_call_operand.hbm [shape: f32[2,8,128], index: 4, kind: output, shape index: {1}]  }
   0x1   :  { %12 = vsyncpa [#allocation3 + $0x1], 0 }
   0x2   :  { %13 = vsyncpa [#allocation6], 0 }
   0x3   :  { %14 = vsyncpa [#allocation4], 0 }
   0x4   :  { %16 = vsyncpa [#allocation4 + $0x1], 0 }
   0x5   :  { %17 = vsyncpa [#allocation9], 0 }
   0x6   :  { %19 = vsyncpa [#allocation9 + $0x1], 0  ;;  %s1249_s15 = smov 0   ;;  %s1251_s16 = smov 0  }
   0x7   :  { %s1253_s17 = smov 0   ;;  %s1255_s18 = smov 0  }
   0x8 LB: > { %s1270_s19 = sadd.s32 4294967295, %s1214_s18   ;;  %s814_s20 = sadd.s32 4294967294, %s1214_s18   ;;  %s1214_s18 = sphi %s1255_s18, %s1688_s18   ;;  %s1210_s17 = sphi %s1253_s17, %s1687_s17   ;;  %s1206_s16 = sphi %s1251_s16, %s1686_s16   ;;  %s1202_s15 = sphi %s1249_s15, %s1685_s15  }
   0x9   : > { %p45_p0 = scmp.ne.s32.totalorder %s1206_s16, %s1202_s15  ;;  %p1667_p1 = scmp.eq.s32.totalorder %s1270_s19, 0 }
   0xa   : > { %p117_p3 = scmp.eq.s32.totalorder %s814_s20, 1  ;;  %p815_p5 = scmp.ge.s32.totalorder %s1214_s18, 1 }
   0xb   : > { %p1279_p4 = por %p1667_p1, %p45_p0  ;;  %p150_p7 = scmp.lt.s32.totalorder %s1214_s18, 3 }
   0xc   : > { %p1284_p6 = por %p117_p3, %p45_p0  ;;  %s1216_s24 = smov [#allocation5]  }
   0xd   : > { %s1671_s21 = scalar_select %p1279_p4, 1, 0 }
   0xe   : > { %s1672_s22 = scalar_select %p1284_p6, 1, 0 }
   0xf   : > { %p1289_p8 = pnand %p815_p5, %p150_p7  ;;  %s162_s25 = sshll.u32 %s1216_s24, 4  ;;  %s163_s25 = int_to_ptr.vmem [resolvable:$true] %s162_s25 }
  0x10   : > { %s1303_s27 = sadd.s32 1, %s1214_s18   ;;  %s32_s28 = sadd.s32 1, %s1210_s17 }
  0x11   : > { %s1673_s23 = scalar_select %p1289_p8, 1, 0 }
  0x12   : > { %p1006_p9 = pneg %p1289_p8  ;;  %s29_s29 = ssub.s32 %s1214_s18, %s1303_s27 }
  0x13   : > { %s1073_s30 = scalar_lea.vmem %s163_s25, 2048  ;;  %p1081_p5 = scmp.lt.s32.totalorder %s163_s25, %s163_s25 }
  0x14   : > { %p1298_p11 = pnand %p1006_p9, %p1667_p1  ;;  %p1074_p13 = scmp.ne.s32.totalorder %s163_s25, %s1073_s30 }
  0x15   : > { %p1082_p7 = scmp.lt.s32.totalorder %s1073_s30, %s1073_s30 }
  0x16   : > { %p1064_p12 = pneg %p1298_p11 }
  0x17   : > { %p1083_p10 = por %p1082_p7, %p1081_p5 }
  0x18   : > { %p1076_p0 = pnand %p1074_p13, %p1064_p12 }
  0x1a   : > { %p1077_p3 = pneg %p1076_p0 }
  0x1c   : > { %p1084_p2 = pnand %p1083_p10, %p1077_p3 }
  0x1e   : > { %1087 = shalt.err (!%p1084_p2)
}
  0x1f   : > { %s1217_s5 = smov 128   ;;  %s1218_s6 = smov 8  }
  0x20   : > { %1009 = dma.hbm_to_vmem [thread:$0]  (!%p1298_p11), %s1663_s1, 2048, %s163_s25, [#allocation6], %s1217_s5, %s1217_s5, %s1218_s6  }
  0x21   : > { %p30_p2 = scmp.eq.s32.totalorder %s29_s29, 0  ;;  %p39_p9 = scmp.ne.s32.totalorder %s1210_s17, %s1206_s16 }
  0x22   : > { %p40_p10 = scmp.eq.s32.totalorder %s1214_s18, 0  ;;  %p1022_p12 = scmp.lt.s32.totalorder %s1214_s18, 2 }
  0x23   : > { %s1323_s9 = scalar_select %p30_p2, %s1210_s17, %s32_s28  }
  0x24   : > { %p41_p13 = por %p40_p10, %p39_p9  ;;  %p1675_p0 = scmp.eq.s32.totalorder %s1270_s19, 1 }
  0x25   : > { %s179_s11 = sand.u32 1, %s1210_s17   ;;  %s834_s12 = sshll.u32 %s1214_s18, 12 }
  0x26   : > { %p1327_p3 = por %p1675_p0, %p39_p9  ;;  %s818_s13 = sshll.u32 %s179_s11, 8 }
  0x27   : > { %s1336_s24 = scalar_lea.hbm %s1662_s0, %s834_s12  ;;  %s183_s25 = scalar_lea.vmem [#allocation2], %s818_s13 }
  0x28   : > { %s1676_s10 = scalar_select %p1327_p3, 1, 0 }
  0x29   : > { %s190_s26 = sshll.u32 %s183_s25, 4  ;;  %p1338_p11 = pnand %p1022_p12, %p41_p13  ;;  %s1342_s26 = int_to_ptr.vmem [resolvable:$true] %s190_s26 }
  0x2a   : > { %s1344_s29 = scalar_lea.sflag [#allocation3], %s179_s11  ;;  %s1088_s30 = scalar_lea.hbm %s1336_s24, 4096 }
  0x2b   : > { %p1089_p5 = scmp.ne.s32.totalorder %s1336_s24, %s1088_s30  ;;  %p1090_p7 = pneg %p1338_p11 }
  0x2c   : > { %s1093_s12 = scalar_lea.hbm %s1662_s0, 8192  ;;  %p1094_p10 = scmp.lt.s32.totalorder %s1336_s24, %s1662_s0 }
  0x2d   : > { %p1091_p2 = pnand %p1090_p7, %p1089_p5  ;;  %p1095_p12 = scmp.lt.s32.totalorder %s1093_s12, %s1088_s30 }
  0x2f   : > { %p1092_p9 = pneg %p1091_p2  ;;  %p1096_p13 = por %p1095_p12, %p1094_p10 }
  0x31   : > { %p1097_p0 = pnand %p1096_p13, %p1092_p9 }
  0x33   : > { %1100 = shalt.err (!%p1097_p0)
}
  0x34   : > { %s1101_s11 = scalar_lea.vmem %s1342_s26, 4096  ;;  %s1219_s20 = smov [#allocation2]  }
  0x35   : > { %p1102_p1 = scmp.ne.s32.totalorder %s1342_s26, %s1101_s11  ;;  %s1106_s25 = sshll.u32 %s1219_s20, 4  ;;  %s1107_s25 = int_to_ptr.vmem [resolvable:$false] %s1106_s25 }
  0x36   : > { %s1108_s7 = scalar_lea.vmem %s1107_s25, 8192  ;;  %p1109_p2 = scmp.lt.s32.totalorder %s1342_s26, %s1107_s25 }
  0x37   : > { %p1104_p6 = pnand %p1102_p1, %p1090_p7  ;;  %p1110_p3 = scmp.lt.s32.totalorder %s1108_s7, %s1101_s11 }
  0x39   : > { %p1105_p5 = pneg %p1104_p6  ;;  %p1111_p4 = por %p1110_p3, %p1109_p2 }
  0x3b   : > { %p1112_p8 = pnand %p1111_p4, %p1105_p5 }
  0x3d   : > { %1115 = shalt.err (!%p1112_p8)
}
  0x3e   : > { %1013 = dma.hbm_to_vmem [thread:$0]  (!%p1338_p11), %s1336_s24, 4096, %s1342_s26, %s1344_s29, %s1217_s5, %s1217_s5, %s1218_s6  }
  0x3f   : > { %p1678_p1 = scmp.ne.s32.totalorder %s1673_s23, 0 }
  0x40   : > { %s1371_s30 = sand.u32 (!%p1678_p1), 1, %s1206_s16   ;;  %p1679_p4 = scmp.ne.s32.totalorder (!%p1678_p1), %s1671_s21, 0 }
  0x41   : > { %202 = sbr.rel (%p1678_p1) target bundleno = 407 (0x197), region = 32  ;;  %s822_s8 = sshll.u32 (!%p1678_p1), %s1371_s30, 8 }
  0x42   : > { %s205_s12 = scalar_lea.sflag (!%p1678_p1), [#allocation3], %s1371_s30  ;;  %s1377_s28 = scalar_lea.vmem (!%p1678_p1), [#allocation2], %s822_s8 }
  0x46   : > { %1185 = dma.done.wait (%p1679_p4), %s205_s12, 4096  }
  0x47   : > { %1187 = vsyncadd (%p1679_p4), %s205_s12, 4294963200  ;;  %p1680_p6 = scmp.eq.s32.totalorder %s1270_s19, 0 }
  0x49   : > { %1189 = dma.done.wait (%p1680_p6), [#allocation6], 2048   ;;  %p1681_p8 = pmov %p1680_p6 }
  0x4a   : > { %v291_v0 = vld [vmem:[#allocation5 + $0x78] sm:$0xff]  ;;  %v290_v1 = vld [vmem:[#allocation5 + $0x70] sm:$0xff]  ;;  %v289_v2 = vld [vmem:[#allocation5 + $0x68] sm:$0xff]  ;;  %s1427_s5 = scalar_lea.vmem [#allocation7], %s822_s8  ;;  %s835_s6 = sshll.u32 %s1270_s19, 12 }
  0x4b   : > { %1191 = vsyncadd (%p1681_p8), [#allocation6], 4294965248  ;;  %884 = vmatprep.subr.mxu0 %v291_v0  ;;  %964 = vmatprep.subr.mxu1 %v291_v0  ;;  %v288_v3 = vld [vmem:[#allocation5 + $0x60] sm:$0xff]  ;;  %v287_v5 = vld [vmem:[#allocation5 + $0x58] sm:$0xff]  ;;  %s686_s24 = sshll.u32 %s1427_s5, 4  ;;  %s1537_s13 = scalar_lea.hbm %s1665_s3, %s835_s6  ;;  %s1539_s24 = int_to_ptr.vmem [resolvable:$true] %s686_s24 }
  0x4c   : > { %885 = vmatpush3.msra.mxu0 %v291_v0  ;;  %980 = vmatpush3.msra.mxu1 %v291_v0  ;;  %v244_v4 = vld [vmem:[%s1377_s28] sm:$0xff]  ;;  %v286_v6 = vld [vmem:[#allocation5 + $0x50] sm:$0xff]  ;;  %v285_v7 = vld [vmem:[#allocation5 + $0x48] sm:$0xff]  ;;  %s668_s14 = scalar_lea.sflag [#allocation4], %s1371_s30  ;;  %s1116_s11 = scalar_lea.vmem %s1539_s24, 4096 }
  0x4d   : > { %886 = vmatprep.subr.mxu0 %v290_v1  ;;  %965 = vmatprep.subr.mxu1 %v290_v1  ;;  %v284_v8 = vld [vmem:[#allocation5 + $0x40] sm:$0xff]  ;;  %v283_v9 = vld [vmem:[#allocation5 + $0x38] sm:$0xff]  ;;  %v282_v10 = vld [vmem:[#allocation5 + $0x30] sm:$0xff]  ;;  %p1117_p3 = scmp.ne.s32.totalorder %s1539_s24, %s1116_s11  ;;  %p1682_p11 = scmp.ne.s32.totalorder %s1676_s10, 0 }
  0x4e   : > { %887 = vmatpush3.msra.mxu0 %v290_v1  ;;  %981 = vmatpush3.msra.mxu1 %v290_v1  ;;  %v281_v11 = vld [vmem:[#allocation5 + $0x28] sm:$0xff]  ;;  %v280_v12 = vld [vmem:[#allocation5 + $0x20] sm:$0xff]  ;;  %v279_v13 = vld [vmem:[#allocation5 + $0x18] sm:$0xff]  ;;  %s1220_s20 = smov [#allocation7]  }
  0x4f   : > { %888 = vmatprep.subr.mxu0 %v289_v2  ;;  %966 = vmatprep.subr.mxu1 %v289_v2  ;;  %v278_v14 = vld [vmem:[#allocation5 + $0x10] sm:$0xff]  ;;  %v277_v15 = vld [vmem:[#allocation5 + $0x8] sm:$0xff]  ;;  %v276_v16 = vld [vmem:[#allocation5] sm:$0xff]  ;;  %p1118_p7 = pnand %p1117_p3, %p1682_p11  ;;  %s1120_s25 = sshll.u32 %s1220_s20, 4  ;;  %s1121_s25 = int_to_ptr.vmem [resolvable:$false] %s1120_s25 }
  0x50   : > { %889 = vmatpush3.msra.mxu0 %v289_v2  ;;  %916 = vmatprep.mubr.f32.mxu0 %v244_v4  ;;  %v245_v17 = vld [vmem:[%s1377_s28 + $0x8] sm:$0xff]  ;;  %v246_v18 = vld [vmem:[%s1377_s28 + $0x10] sm:$0xff]  ;;  %v260_v19 = vld [vmem:[%s1377_s28 + $0x80] sm:$0xff]  ;;  %s1122_s7 = scalar_lea.vmem %s1121_s25, 8192  ;;  %p1123_p10 = scmp.lt.s32.totalorder %s1539_s24, %s1121_s25 }
  0x51   : > { %890 = vmatprep.subr.mxu0 %v288_v3  ;;  %982 = vmatpush3.msra.mxu1 %v289_v2  ;;  %v261_v20 = vld [vmem:[%s1377_s28 + $0x88] sm:$0xff]  ;;  %v262_v21 = vld [vmem:[%s1377_s28 + $0x90] sm:$0xff]  ;;  %v247_v22 = vld [vmem:[%s1377_s28 + $0x18] sm:$0xff]  ;;  %p1119_p9 = pneg %p1118_p7  ;;  %p1124_p12 = scmp.lt.s32.totalorder %s1122_s7, %s1116_s11 }
  0x52   : > { %891 = vmatpush3.msra.mxu0 %v288_v3  ;;  %967 = vmatprep.subr.mxu1 %v288_v3  ;;  %v248_v23 = vld [vmem:[%s1377_s28 + $0x20] sm:$0xff]  ;;  %v263_v24 = vld [vmem:[%s1377_s28 + $0x98] sm:$0xff]  ;;  %v249_v26 = vld [vmem:[%s1377_s28 + $0x28] sm:$0xff] }
  0x53   : > { %892 = vmatprep.subr.mxu0 %v287_v5  ;;  %983 = vmatpush3.msra.mxu1 %v288_v3  ;;  %v264_v25 = vld [vmem:[%s1377_s28 + $0xa0] sm:$0xff]  ;;  %v250_v27 = vld [vmem:[%s1377_s28 + $0x30] sm:$0xff]  ;;  %v265_v28 = vld [vmem:[%s1377_s28 + $0xa8] sm:$0xff]  ;;  %p1125_p13 = por %p1124_p12, %p1123_p10 }
  0x54   : > { %893 = vmatpush3.msra.mxu0 %v287_v5  ;;  %968 = vmatprep.subr.mxu1 %v287_v5  ;;  %v266_v29 = vld [vmem:[%s1377_s28 + $0xb0] sm:$0xff]  ;;  %v251_v30 = vld [vmem:[%s1377_s28 + $0x38] sm:$0xff]  ;;  %v252_v31 = vld [vmem:[%s1377_s28 + $0x40] sm:$0xff] }
  0x55   : > { %894 = vmatprep.subr.mxu0 %v286_v6  ;;  %984 = vmatpush3.msra.mxu1 %v287_v5  ;;  %v267_v32 = vld [vmem:[%s1377_s28 + $0xb8] sm:$0xff]  ;;  %v268_v33 = vld [vmem:[%s1377_s28 + $0xc0] sm:$0xff]  ;;  %v253_v34 = vld [vmem:[%s1377_s28 + $0x48] sm:$0xff]  ;;  %p1126_p0 = pnand %p1125_p13, %p1119_p9 }
  0x56   : > { %895 = vmatpush3.msra.mxu0 %v286_v6  ;;  %969 = vmatprep.subr.mxu1 %v286_v6  ;;  %v254_v35 = vld [vmem:[%s1377_s28 + $0x50] sm:$0xff]  ;;  %v269_v36 = vld [vmem:[%s1377_s28 + $0xc8] sm:$0xff]  ;;  %v255_v38 = vld [vmem:[%s1377_s28 + $0x58] sm:$0xff] }
  0x57   : > { %896 = vmatprep.subr.mxu0 %v285_v7  ;;  %985 = vmatpush3.msra.mxu1 %v286_v6  ;;  %v270_v37 = vld [vmem:[%s1377_s28 + $0xd0] sm:$0xff]  ;;  %v256_v39 = vld [vmem:[%s1377_s28 + $0x60] sm:$0xff]  ;;  %v271_v40 = vld [vmem:[%s1377_s28 + $0xd8] sm:$0xff] }
  0x58   : > { %897 = vmatpush3.msra.mxu0 %v285_v7  ;;  %970 = vmatprep.subr.mxu1 %v285_v7  ;;  %v272_v41 = vld [vmem:[%s1377_s28 + $0xe0] sm:$0xff]  ;;  %v257_v42 = vld [vmem:[%s1377_s28 + $0x68] sm:$0xff]  ;;  %v258_v43 = vld [vmem:[%s1377_s28 + $0x70] sm:$0xff] }
  0x59   : > { %898 = vmatprep.subr.mxu0 %v284_v8  ;;  %986 = vmatpush3.msra.mxu1 %v285_v7  ;;  %v273_v44 = vld [vmem:[%s1377_s28 + $0xe8] sm:$0xff]  ;;  %v274_v45 = vld [vmem:[%s1377_s28 + $0xf0] sm:$0xff]  ;;  %v259_v46 = vld [vmem:[%s1377_s28 + $0x78] sm:$0xff] }
  0x5a   : > { %899 = vmatpush3.msra.mxu0 %v284_v8  ;;  %971 = vmatprep.subr.mxu1 %v284_v8  ;;  %v275_v47 = vld [vmem:[%s1377_s28 + $0xf8] sm:$0xff]  ;;  %v1422_v48 = vld [vmem:[%s1664_s2] ss:$0 sm:$0xff] }
  0x5b   : > { %900 = vmatprep.subr.mxu0 %v283_v9  ;;  %987 = vmatpush3.msra.mxu1 %v284_v8 }
  0x5c   : > { %901 = vmatpush3.msra.mxu0 %v283_v9  ;;  %972 = vmatprep.subr.mxu1 %v283_v9 }
  0x5d   : > { %902 = vmatprep.subr.mxu0 %v282_v10  ;;  %988 = vmatpush3.msra.mxu1 %v283_v9 }
  0x5e   : > { %903 = vmatpush3.msra.mxu0 %v282_v10  ;;  %973 = vmatprep.subr.mxu1 %v282_v10 }
  0x5f   : > { %904 = vmatprep.subr.mxu0 %v281_v11  ;;  %989 = vmatpush3.msra.mxu1 %v282_v10 }
  0x60   : > { %905 = vmatpush3.msra.mxu0 %v281_v11  ;;  %974 = vmatprep.subr.mxu1 %v281_v11 }
  0x61   : > { %906 = vmatprep.subr.mxu0 %v280_v12  ;;  %990 = vmatpush3.msra.mxu1 %v281_v11 }
  0x62   : > { %907 = vmatpush3.msra.mxu0 %v280_v12  ;;  %975 = vmatprep.subr.mxu1 %v280_v12 }
  0x63   : > { %908 = vmatprep.subr.mxu0 %v279_v13  ;;  %991 = vmatpush3.msra.mxu1 %v280_v12 }
  0x64   : > { %909 = vmatpush3.msra.mxu0 %v279_v13  ;;  %976 = vmatprep.subr.mxu1 %v279_v13 }
  0x65   : > { %910 = vmatprep.subr.mxu0 %v278_v14  ;;  %992 = vmatpush3.msra.mxu1 %v279_v13 }
  0x66   : > { %911 = vmatpush3.msra.mxu0 %v278_v14  ;;  %977 = vmatprep.subr.mxu1 %v278_v14 }
  0x67   : > { %912 = vmatprep.subr.mxu0 %v277_v15  ;;  %993 = vmatpush3.msra.mxu1 %v278_v14 }
  0x68   : > { %913 = vmatpush3.msra.mxu0 %v277_v15  ;;  %978 = vmatprep.subr.mxu1 %v277_v15 }
  0x69   : > { %914 = vmatprep.subr.mxu0 %v276_v16  ;;  %994 = vmatpush3.msra.mxu1 %v277_v15 }
  0x6a   : > { %915 = vmatpush3.msra.mxu0 %v276_v16  ;;  %979 = vmatprep.subr.mxu1 %v276_v16 }
  0x6b   : > { %917 = vmatmul.mubr.f32.vlgmr.msra.gmra.mxu0 %v245_v17  ;;  %995 = vmatpush3.msra.mxu1 %v276_v16 }
  0x6c   : > { %919 = vmatprep.mubr.f32.mxu0 %v246_v18  ;;  %940 = vmatprep.mubr.f32.mxu1 %v260_v19 }
  0x6d   : > { %941 = vmatmul.mubr.f32.vlgmr.msra.gmra.mxu1 %v261_v20 }
  0x6e   : > { %943 = vmatprep.mubr.f32.mxu1 %v262_v21 }
  0x6f   : > { %920 = vmatmul.mubr.f32.gmra.mxu0 %v247_v22 }
  0x70   : > { %922 = vmatprep.mubr.f32.mxu0 %v248_v23 }
  0x71   : > { %944 = vmatmul.mubr.f32.gmra.mxu1 %v263_v24 }
  0x72   : > { %946 = vmatprep.mubr.f32.mxu1 %v264_v25 }
  0x73   : > { %923 = vmatmul.mubr.f32.gmra.mxu0 %v249_v26 }
  0x74   : > { %925 = vmatprep.mubr.f32.mxu0 %v250_v27 }
  0x75   : > { %947 = vmatmul.mubr.f32.gmra.mxu1 %v265_v28 }
  0x76   : > { %949 = vmatprep.mubr.f32.mxu1 %v266_v29 }
  0x77   : > { %926 = vmatmul.mubr.f32.gmra.mxu0 %v251_v30 }
  0x78   : > { %928 = vmatprep.mubr.f32.mxu0 %v252_v31 }
  0x79   : > { %950 = vmatmul.mubr.f32.gmra.mxu1 %v267_v32 }
  0x7a   : > { %952 = vmatprep.mubr.f32.mxu1 %v268_v33 }
  0x7b   : > { %929 = vmatmul.mubr.f32.gmra.mxu0 %v253_v34 }
  0x7c   : > { %931 = vmatprep.mubr.f32.mxu0 %v254_v35 }
  0x7d   : > { %953 = vmatmul.mubr.f32.gmra.mxu1 %v269_v36 }
  0x7e   : > { %955 = vmatprep.mubr.f32.mxu1 %v270_v37 }
  0x7f   : > { %932 = vmatmul.mubr.f32.gmra.mxu0 %v255_v38 }
  0x80   : > { %934 = vmatprep.mubr.f32.mxu0 %v256_v39 }
  0x81   : > { %956 = vmatmul.mubr.f32.gmra.mxu1 %v271_v40 }
  0x82   : > { %958 = vmatprep.mubr.f32.mxu1 %v272_v41 }
  0x83   : > { %935 = vmatmul.mubr.f32.gmra.mxu0 %v257_v42 }
  0x84   : > { %937 = vmatprep.mubr.f32.mxu0 %v258_v43 }
  0x85   : > { %959 = vmatmul.mubr.f32.gmra.mxu1 %v273_v44 }
  0x86   : > { %961 = vmatprep.mubr.f32.mxu1 %v274_v45 }
  0x87   : > { %938 = vmatmul.mubr.f32.gmra.mxu0 %v259_v46 }
  0x89   : > { %962 = vmatmul.mubr.f32.gmra.mxu1 %v275_v47 }
 0x12b   : > { %v918_v49 = vpop.f32.mrf.mxu0 }
 0x12c   : > { %v371_v50 = vadd.f32 %v918_v49, %v1422_v48 }
 0x12d   : > { %v365_v51 = vpop.f32.mrf.mxu0  ;;  %v942_v52 = vpop.f32.mrf.mxu1 }
 0x12e   : > { %525 = vst [vmem:[%s1427_s5 + $0x8] sm:$0xff] %v371_v50  ;;  %v366_v53 = vadd.f32 %v1422_v48, %v365_v51  ;;  %v1432_v54 = vadd.f32 %v942_v52, %v1422_v48  ;;  %v594_v62 = vmul.f32 %v371_v50, %v371_v50 }
 0x12f   : > { %v921_v55 = vpop.f32.mrf.mxu0  ;;  %v445_v56 = vpop.f32.mrf.mxu1 }
 0x130   : > { %524 = vst [vmem:[%s1427_s5] sm:$0xff] %v366_v53  ;;  %v593_v57 = vmul.f32 %v366_v53, %v366_v53  ;;  %v381_v58 = vadd.f32 %v921_v55, %v1422_v48  ;;  %541 = vst [vmem:[%s1427_s5 + $0x88] sm:$0xff] %v1432_v54  ;;  %v1439_v60 = vadd.f32 %v1422_v48, %v445_v56 }
 0x131   : > { %v375_v59 = vpop.f32.mrf.mxu0  ;;  %v945_v61 = vpop.f32.mrf.mxu1  ;;  %v556_v63 = vadd.f32 %v371_v50, %v366_v53 }
 0x132   : > { %527 = vst [vmem:[%s1427_s5 + $0x18] sm:$0xff] %v381_v58  ;;  %v376_v0 = vadd.f32 %v1422_v48, %v375_v59  ;;  %v1444_v1 = vadd.f32 %v945_v61, %v1422_v48  ;;  %540 = vst [vmem:[%s1427_s5 + $0x80] sm:$0xff] %v1439_v60  ;;  %v625_v4 = vadd.f32 %v594_v62, %v593_v57 }
 0x133   : > { %v924_v2 = vpop.f32.mrf.mxu0  ;;  %v455_v3 = vpop.f32.mrf.mxu1  ;;  %v596_v11 = vmul.f32 %v381_v58, %v381_v58 }
 0x134   : > { %526 = vst [vmem:[%s1427_s5 + $0x10] sm:$0xff] %v376_v0  ;;  %v557_v5 = vadd.f32 %v556_v63, %v376_v0  ;;  %v595_v6 = vmul.f32 %v376_v0, %v376_v0  ;;  %v391_v7 = vadd.f32 %v924_v2, %v1422_v48  ;;  %543 = vst [vmem:[%s1427_s5 + $0x98] sm:$0xff] %v1444_v1 }
 0x135   : > { %v385_v8 = vpop.f32.mrf.mxu0  ;;  %v1453_v9 = vadd.f32 %v1422_v48, %v455_v3  ;;  %v948_v10 = vpop.f32.mrf.mxu1 }
 0x136   : > { %v626_v12 = vadd.f32 %v625_v4, %v595_v6  ;;  %529 = vst [vmem:[%s1427_s5 + $0x28] sm:$0xff] %v391_v7  ;;  %v386_v13 = vadd.f32 %v1422_v48, %v385_v8  ;;  %v558_v14 = vadd.f32 %v557_v5, %v381_v58  ;;  %v1460_v16 = vadd.f32 %v948_v10, %v1422_v48 }
 0x137   : > { %v927_v15 = vpop.f32.mrf.mxu0  ;;  %542 = vst [vmem:[%s1427_s5 + $0x90] sm:$0xff] %v1453_v9  ;;  %v465_v17 = vpop.f32.mrf.mxu1  ;;  %v598_v25 = vmul.f32 %v391_v7, %v391_v7 }
 0x138   : > { %528 = vst [vmem:[%s1427_s5 + $0x20] sm:$0xff] %v386_v13  ;;  %v559_v18 = vadd.f32 %v558_v14, %v386_v13  ;;  %v597_v19 = vmul.f32 %v386_v13, %v386_v13  ;;  %v627_v20 = vadd.f32 %v626_v12, %v596_v11  ;;  %v401_v21 = vadd.f32 %v927_v15, %v1422_v48 }
 0x139   : > { %v395_v22 = vpop.f32.mrf.mxu0  ;;  %545 = vst [vmem:[%s1427_s5 + $0xa8] sm:$0xff] %v1460_v16  ;;  %v1467_v23 = vadd.f32 %v1422_v48, %v465_v17  ;;  %v951_v24 = vpop.f32.mrf.mxu1 }
 0x13a   : > { %v628_v26 = vadd.f32 %v627_v20, %v597_v19  ;;  %531 = vst [vmem:[%s1427_s5 + $0x38] sm:$0xff] %v401_v21  ;;  %v396_v27 = vadd.f32 %v1422_v48, %v395_v22  ;;  %v560_v28 = vadd.f32 %v559_v18, %v391_v7  ;;  %v1474_v30 = vadd.f32 %v951_v24, %v1422_v48 }
 0x13b   : > { %v930_v29 = vpop.f32.mrf.mxu0  ;;  %544 = vst [vmem:[%s1427_s5 + $0xa0] sm:$0xff] %v1467_v23  ;;  %v475_v31 = vpop.f32.mrf.mxu1  ;;  %v600_v39 = vmul.f32 %v401_v21, %v401_v21 }
 0x13c   : > { %530 = vst [vmem:[%s1427_s5 + $0x30] sm:$0xff] %v396_v27  ;;  %v561_v32 = vadd.f32 %v560_v28, %v396_v27  ;;  %v599_v33 = vmul.f32 %v396_v27, %v396_v27  ;;  %v629_v34 = vadd.f32 %v628_v26, %v598_v25  ;;  %v411_v35 = vadd.f32 %v930_v29, %v1422_v48 }
 0x13d   : > { %v405_v36 = vpop.f32.mrf.mxu0  ;;  %547 = vst [vmem:[%s1427_s5 + $0xb8] sm:$0xff] %v1474_v30  ;;  %v1481_v37 = vadd.f32 %v1422_v48, %v475_v31  ;;  %v954_v38 = vpop.f32.mrf.mxu1 }
 0x13e   : > { %v630_v40 = vadd.f32 %v629_v34, %v599_v33  ;;  %533 = vst [vmem:[%s1427_s5 + $0x48] sm:$0xff] %v411_v35  ;;  %v406_v41 = vadd.f32 %v1422_v48, %v405_v36  ;;  %v562_v42 = vadd.f32 %v561_v32, %v401_v21  ;;  %v1488_v44 = vadd.f32 %v954_v38, %v1422_v48 }
 0x13f   : > { %v933_v43 = vpop.f32.mrf.mxu0  ;;  %546 = vst [vmem:[%s1427_s5 + $0xb0] sm:$0xff] %v1481_v37  ;;  %v485_v45 = vpop.f32.mrf.mxu1  ;;  %v602_v55 = vmul.f32 %v411_v35, %v411_v35 }
 0x140   : > { %532 = vst [vmem:[%s1427_s5 + $0x40] sm:$0xff] %v406_v41  ;;  %v563_v46 = vadd.f32 %v562_v42, %v406_v41  ;;  %v601_v47 = vmul.f32 %v406_v41, %v406_v41  ;;  %v631_v49 = vadd.f32 %v630_v40, %v600_v39  ;;  %v421_v50 = vadd.f32 %v933_v43, %v1422_v48 }
 0x141   : > { %v415_v51 = vpop.f32.mrf.mxu0  ;;  %549 = vst [vmem:[%s1427_s5 + $0xc8] sm:$0xff] %v1488_v44  ;;  %v1495_v52 = vadd.f32 %v1422_v48, %v485_v45  ;;  %v957_v53 = vpop.f32.mrf.mxu1 }
 0x142   : > { %v632_v56 = vadd.f32 %v631_v49, %v601_v47  ;;  %535 = vst [vmem:[%s1427_s5 + $0x58] sm:$0xff] %v421_v50  ;;  %v416_v57 = vadd.f32 %v1422_v48, %v415_v51  ;;  %v564_v58 = vadd.f32 %v563_v46, %v411_v35  ;;  %v1502_v61 = vadd.f32 %v957_v53, %v1422_v48 }
 0x143   : > { %v936_v59 = vpop.f32.mrf.mxu0  ;;  %548 = vst [vmem:[%s1427_s5 + $0xc0] sm:$0xff] %v1495_v52  ;;  %v495_v62 = vpop.f32.mrf.mxu1  ;;  %v604_v7 = vmul.f32 %v421_v50, %v421_v50 }
 0x144   : > { %534 = vst [vmem:[%s1427_s5 + $0x50] sm:$0xff] %v416_v57  ;;  %v565_v63 = vadd.f32 %v564_v58, %v416_v57  ;;  %v603_v0 = vmul.f32 %v416_v57, %v416_v57  ;;  %v633_v2 = vadd.f32 %v632_v56, %v602_v55  ;;  %v431_v3 = vadd.f32 %v936_v59, %v1422_v48 }
 0x145   : > { %v425_v4 = vpop.f32.mrf.mxu0  ;;  %551 = vst [vmem:[%s1427_s5 + $0xd8] sm:$0xff] %v1502_v61  ;;  %v1509_v5 = vadd.f32 %v1422_v48, %v495_v62  ;;  %v960_v6 = vpop.f32.mrf.mxu1 }
 0x146   : > { %v634_v8 = vadd.f32 %v633_v2, %v603_v0  ;;  %537 = vst [vmem:[%s1427_s5 + $0x68] sm:$0xff] %v431_v3  ;;  %v426_v10 = vadd.f32 %v1422_v48, %v425_v4  ;;  %v566_v11 = vadd.f32 %v565_v63, %v421_v50  ;;  %v1516_v13 = vadd.f32 %v960_v6, %v1422_v48 }
 0x147   : > { %v939_v12 = vpop.f32.mrf.mxu0  ;;  %550 = vst [vmem:[%s1427_s5 + $0xd0] sm:$0xff] %v1509_v5  ;;  %v505_v14 = vpop.f32.mrf.mxu1  ;;  %v606_v24 = vmul.f32 %v431_v3, %v431_v3 }
 0x148   : > { %536 = vst [vmem:[%s1427_s5 + $0x60] sm:$0xff] %v426_v10  ;;  %v567_v15 = vadd.f32 %v566_v11, %v426_v10  ;;  %v605_v17 = vmul.f32 %v426_v10, %v426_v10  ;;  %v635_v18 = vadd.f32 %v634_v8, %v604_v7  ;;  %v441_v19 = vadd.f32 %v939_v12, %v1422_v48 }
 0x149   : > { %v435_v20 = vpop.f32.mrf.mxu0  ;;  %553 = vst [vmem:[%s1427_s5 + $0xe8] sm:$0xff] %v1516_v13  ;;  %v1525_v21 = vadd.f32 %v1422_v48, %v505_v14  ;;  %v963_v22 = vpop.f32.mrf.mxu1 }
 0x14a   : > { %v636_v25 = vadd.f32 %v635_v18, %v605_v17  ;;  %539 = vst [vmem:[%s1427_s5 + $0x78] sm:$0xff] %v441_v19  ;;  %v436_v26 = vadd.f32 %v1422_v48, %v435_v20  ;;  %v568_v27 = vadd.f32 %v567_v15, %v431_v3  ;;  %v1532_v28 = vadd.f32 %v963_v22, %v1422_v48 }
 0x14b   : > { %552 = vst [vmem:[%s1427_s5 + $0xe0] sm:$0xff] %v1525_v21  ;;  %v515_v29 = vpop.f32.mrf.mxu1  ;;  %v608_v35 = vmul.f32 %v441_v19, %v441_v19 }
 0x14c   : > { %538 = vst [vmem:[%s1427_s5 + $0x70] sm:$0xff] %v436_v26  ;;  %v569_v31 = vadd.f32 %v568_v27, %v436_v26  ;;  %v607_v32 = vmul.f32 %v436_v26, %v436_v26  ;;  %v637_v33 = vadd.f32 %v636_v25, %v606_v24  ;;  %v1543_v34 = vadd.f32 %v1422_v48, %v515_v29 }
 0x14d   : > { %555 = vst [vmem:[%s1427_s5 + $0xf8] sm:$0xff] %v1532_v28 }
 0x14e   : > { %v638_v36 = vadd.f32 %v637_v33, %v607_v32  ;;  %v570_v38 = vadd.f32 %v569_v31, %v441_v19  ;;  %554 = vst [vmem:[%s1427_s5 + $0xf0] sm:$0xff] %v1543_v34 }
 0x14f   : > { %1129 = shalt.err (!%p1126_p0)
}
 0x150   : > { %s1130_s8 = scalar_lea.hbm %s1537_s13, 4096  ;;  %s1134_s21 = scalar_lea.hbm %s1665_s3, 8192 }
 0x151   : > { %p1131_p5 = scmp.ne.s32.totalorder %s1537_s13, %s1130_s8  ;;  %p1135_p4 = scmp.lt.s32.totalorder %s1537_s13, %s1665_s3 }
 0x152   : > { %p1136_p6 = scmp.lt.s32.totalorder %s1134_s21, %s1130_s8 }
 0x153   : > { %p1132_p2 = pnand %p1131_p5, %p1682_p11 }
 0x154   : > { %p1137_p8 = por %p1136_p6, %p1135_p4 }
 0x155   : > { %p1133_p1 = pneg %p1132_p2 }
 0x157   : > { %p1138_p3 = pnand %p1137_p8, %p1133_p1 }
 0x159   : > { %1141 = shalt.err (!%p1138_p3)
}
 0x15a   : > { %s1221_s6 = smov 128   ;;  %s1222_s26 = smov 8   ;;  %v571_v48 = vadd.f32 %v570_v38, %v1439_v60  ;;  %v609_v39 = vmul.f32 %v1439_v60, %v1439_v60  ;;  %v639_v40 = vadd.f32 %v638_v36, %v608_v35  ;;  %v610_v41 = vmul.f32 %v1432_v54, %v1432_v54 }
 0x15b   : > { %1002 = dma.vmem_to_hbm [thread:$0]  (%p1682_p11), %s1539_s24, 4096, %s1537_s13, %s668_s14, %s1221_s6, %s1221_s6, %s1222_s26   ;;  %v611_v46 = vmul.f32 %v1453_v9, %v1453_v9  ;;  %v612_v49 = vmul.f32 %v1444_v1, %v1444_v1  ;;  %v613_v53 = vmul.f32 %v1467_v23, %v1467_v23  ;;  %v615_v58 = vmul.f32 %v1481_v37, %v1481_v37 }
 0x15c   : > { %v640_v42 = vadd.f32 %v639_v40, %v609_v39  ;;  %v572_v43 = vadd.f32 %v571_v48, %v1432_v54  ;;  %v614_v54 = vmul.f32 %v1460_v16, %v1460_v16  ;;  %v617_v0 = vmul.f32 %v1495_v52, %v1495_v52  ;;  %s825_s24 = sshll.u32 %s1371_s30, 3  ;;  %s831_s29 = sshll.u32 %s1270_s19, 7 }
 0x15d   : > { %v619_v6 = vmul.f32 %v1509_v5, %v1509_v5  ;;  %v621_v11 = vmul.f32 %v1525_v21, %v1525_v21  ;;  %v623_v17 = vmul.f32 %v1543_v34, %v1543_v34  ;;  %vm662_vm0 = vcmask 1040384   ;;  %s241_s13 = scalar_lea.vmem [#allocation8], %s825_s24  ;;  %s1625_s25 = scalar_lea.hbm %s1666_s4, %s831_s29 }
 0x15e   : > { %v573_v45 = vadd.f32 %v572_v43, %v1453_v9  ;;  %v641_v47 = vadd.f32 %v640_v42, %v610_v41  ;;  %s702_s14 = sshll.u32 %s241_s13, 4  ;;  %vm664_vm1 = vcmask 1041408   ;;  %s673_s7 = scalar_lea.sflag [#allocation9], %s1371_s30  ;;  %s703_s14 = int_to_ptr.vmem [resolvable:$true] %s702_s14 }
 0x15f   : > { %s1142_s8 = scalar_lea.vmem %s703_s14, 128  ;;  %s1223_s19 = smov [#allocation8]  }
 0x160   : > { %v642_v50 = vadd.f32 %v641_v47, %v611_v46  ;;  %v574_v51 = vadd.f32 %v573_v45, %v1444_v1  ;;  %v616_v1 = vmul.f32 %v1474_v30, %v1474_v30  ;;  %p1143_p7 = scmp.ne.s32.totalorder %s703_s14, %s1142_s8  ;;  %s1146_s12 = sshll.u32 %s1223_s19, 4  ;;  %s1147_s12 = int_to_ptr.vmem [resolvable:$false] %s1146_s12 }
 0x161   : > { %s1148_s28 = scalar_lea.vmem %s1147_s12, 256  ;;  %p1149_p12 = scmp.lt.s32.totalorder %s703_s14, %s1147_s12 }
 0x162   : > { %v575_v60 = vadd.f32 %v574_v51, %v1467_v23  ;;  %v643_v55 = vadd.f32 %v642_v50, %v612_v49  ;;  %p1144_p9 = pnand %p1143_p7, %p1682_p11  ;;  %p1150_p13 = scmp.lt.s32.totalorder %s1148_s28, %s1142_s8 }
 0x164   : > { %v644_v56 = vadd.f32 %v643_v55, %v613_v53  ;;  %v576_v57 = vadd.f32 %v575_v60, %v1460_v16  ;;  %v618_v16 = vmul.f32 %v1488_v44, %v1488_v44  ;;  %p1145_p10 = pneg %p1144_p9  ;;  %p1151_p0 = por %p1150_p13, %p1149_p12 }
 0x166   : > { %v577_v9 = vadd.f32 %v576_v57, %v1481_v37  ;;  %v645_v59 = vadd.f32 %v644_v56, %v614_v54  ;;  %p1152_p5 = pnand %p1151_p0, %p1145_p10 }
 0x168   : > { %v646_v62 = vadd.f32 %v645_v59, %v615_v58  ;;  %v578_v63 = vadd.f32 %v577_v9, %v1474_v30  ;;  %v620_v30 = vmul.f32 %v1502_v61, %v1502_v61 }
 0x16a   : > { %v579_v23 = vadd.f32 %v578_v63, %v1495_v52  ;;  %v647_v2 = vadd.f32 %v646_v62, %v616_v1 }
 0x16c   : > { %v648_v3 = vadd.f32 %v647_v2, %v617_v0  ;;  %v580_v4 = vadd.f32 %v579_v23, %v1488_v44  ;;  %v622_v44 = vmul.f32 %v1516_v13, %v1516_v13 }
 0x16e   : > { %v581_v37 = vadd.f32 %v580_v4, %v1509_v5  ;;  %v649_v7 = vadd.f32 %v648_v3, %v618_v16 }
 0x170   : > { %v650_v8 = vadd.f32 %v649_v7, %v619_v6  ;;  %v582_v10 = vadd.f32 %v581_v37, %v1502_v61  ;;  %v624_v61 = vmul.f32 %v1532_v28, %v1532_v28 }
 0x172   : > { %v583_v52 = vadd.f32 %v582_v10, %v1525_v21  ;;  %v651_v12 = vadd.f32 %v650_v8, %v620_v30 }
 0x174   : > { %v652_v14 = vadd.f32 %v651_v12, %v621_v11  ;;  %v584_v5 = vadd.f32 %v583_v52, %v1516_v13 }
 0x176   : > { %v585_v15 = vadd.f32 %v584_v5, %v1543_v34  ;;  %v653_v18 = vadd.f32 %v652_v14, %v622_v44 }
 0x178   : > { %v586_v19 = vadd.f32 %v585_v15, %v1532_v28  ;;  %v654_v20 = vadd.f32 %v653_v18, %v623_v17 }
 0x17a   : > { %v587_v21 = vrot.slane %v586_v19, 4  ;;  %v655_v22 = vadd.f32 %v654_v20, %v624_v61 }
 0x17c   : > { %v588_v24 = vadd.f32 %v587_v21, %v586_v19  ;;  %v656_v25 = vrot.slane %v655_v22, 4 }
 0x17e   : > { %v589_v26 = vrot.slane %v588_v24, 2  ;;  %v657_v27 = vadd.f32 %v656_v25, %v655_v22 }
 0x180   : > { %v590_v13 = vadd.f32 %v589_v26, %v588_v24  ;;  %v658_v29 = vrot.slane %v657_v27, 2 }
 0x182   : > { %v591_v31 = vrot.slane %v590_v13, 1  ;;  %v659_v32 = vadd.f32 %v658_v29, %v657_v27 }
 0x184   : > { %v660_v33 = vrot.slane %v659_v32, 1  ;;  %v592_v28 = vadd.f32 %v591_v31, %v590_v13 }
 0x186   : > { %v661_v34 = vadd.f32 %v660_v33, %v659_v32 }
 0x188   : > { %v663_v35 = vsel %vm662_vm0, %v592_v28, %v661_v34 }
 0x189   : > { %v665_v36 = vsel %vm664_vm1, %v663_v35, 0.0 }
 0x18a   : > { %666 = vst [vmem:[%s241_s13] sm:$0xff] %v665_v36 }
 0x18b   : > { %1155 = shalt.err (!%p1152_p5)
}
 0x18c   : > { %s1156_s21 = scalar_lea.hbm %s1625_s25, 128  ;;  %s1160_s5 = scalar_lea.hbm %s1666_s4, 256 }
 0x18d   : > { %p1157_p2 = scmp.ne.s32.totalorder %s1625_s25, %s1156_s21  ;;  %p1161_p6 = scmp.lt.s32.totalorder %s1625_s25, %s1666_s4 }
 0x18e   : > { %p1162_p8 = scmp.lt.s32.totalorder %s1160_s5, %s1156_s21 }
 0x18f   : > { %p1158_p1 = pnand %p1157_p2, %p1682_p11 }
 0x190   : > { %p1163_p3 = por %p1162_p8, %p1161_p6 }
 0x191   : > { %p1159_p4 = pneg %p1158_p1 }
 0x193   : > { %p1164_p7 = pnand %p1163_p3, %p1159_p4 }
 0x195   : > { %1167 = shalt.err (!%p1164_p7)
}
 0x196   : > { %1003 = dma.vmem_to_hbm [thread:$0]  (%p1682_p11), %s703_s14, 128, %s1625_s25, %s673_s7  }
 0x197 PF: > { %s714_s24 = sand.u32 1, %s1202_s15   ;;  %p1683_p9 = scmp.ne.s32.totalorder %s1672_s22, 0 }
 0x198   : > { %p1684_p10 = scmp.ge.s32.totalorder %s1214_s18, 2  ;;  %s715_s29 = scalar_lea.sflag [#allocation4], %s714_s24 }
 0x19a   : > { %p1015_p12 = pnand %p1684_p10, %p1683_p9 }
 0x19c   : > { %p1016_p13 = pneg %p1015_p12 }
 0x19e   : > { %1193 = dma.done.wait (%p1016_p13), %s715_s29, 4096  }
 0x19f   : > { %1195 = vsyncadd (%p1016_p13), %s715_s29, 4294963200  ;;  %s724_s13 = scalar_lea.sflag [#allocation9], %s714_s24 }
 0x1a0   : > { %1197 = dma.done.wait (%p1016_p13), %s724_s13, 128  }
 0x1a1   : > { %1199 = vsyncadd (%p1016_p13), %s724_s13, 4294967168  ;;  %p22_p11 = scmp.ge.s32.totalorder %s1303_s27, 4   ;;  %s1685_s15 = smov %s1206_s16 }
 0x1a2   : > { %s1686_s16 = smov %s1210_s17  ;;  %s1687_s17 = smov %s1323_s9 }
 0x1a3   : > { %s1688_s18 = smov %s1303_s27  ;;  %24 = sbr.rel (!%p22_p11) target bundleno = 8 (0x8), region = 98 }
 0x1a8   :  { %729 = vsyncpa [#allocation3], 1 }
 0x1a9   :  { %731 = vsyncpa [#allocation3 + $0x1], 1 }
 0x1aa   :  { %732 = vsyncpa [#allocation6], 1 }
 0x1ab   :  { %733 = vsyncpa [#allocation4], 1 }
 0x1ac   :  { %735 = vsyncpa [#allocation4 + $0x1], 1 }
 0x1ad   :  { %736 = vsyncpa [#allocation9], 1 }
 0x1ae   :  { %738 = vsyncpa [#allocation9 + $0x1], 1 }

</bundles_post_ra>
